<compile_context>
chip_gen: v5e
topology: v5e:2x2
jax: 0.10.0
libtpu: 0.0.40
codegen_flags: <defaults>
</compile_context>

<pallas_src>
import functools

import numpy as np
import jax
import jax.numpy as jnp
from jax.experimental import pallas as pl
from jax.experimental.pallas import tpu as pltpu


# pywt Wavelet('db4') reconstruction filters (fixed, non-learned), hard-coded so the
# script needs no pywt / file IO.
DB4_REC_LO = np.array(
    [0.23037781330885523, 0.7148465705525415, 0.6308807679295904,
     -0.02798376941698385, -0.18703481171888114, 0.030841381835986965,
     0.032883011666982945, -0.010597401784997278], dtype=np.float32)
DB4_REC_HI = np.array(
    [-0.010597401784997278, -0.032883011666982945, 0.030841381835986965,
     0.18703481171888114, -0.02798376941698385, -0.6308807679295904,
     0.7148465705525415, -0.23037781330885523], dtype=np.float32)


def _dwt_polyphase_kernel(lo_taps, hi_taps, xe_ref, xo_ref, lo_ref, hi_ref):
    """Depthwise stride-2 8-tap conv (torch cross-correlation) via polyphase shifted adds.

        out[n] = sum_j f[j] * x_pad[2n + j]
               = sum_{m=0..3} f[2m] * x_even[n+m] + f[2m+1] * x_odd[n+m]

    where x_even[i] = x_pad[2i], x_odd[i] = x_pad[2i+1].  Pure VPU work; both filters
    (low / high) are computed from the same streamed tap loads, and the per-tap reads are
    Ref slices so Mosaic streams each shifted window instead of slicing a live value.
    """
    w = lo_ref.shape[-1]
    lo_terms = []
    hi_terms = []
    for m in range(4):                      # unrolled: 4 even taps + 4 odd taps
        e = xe_ref[:, m:m + w]
        o = xo_ref[:, m:m + w]
        lo_terms.append(lo_taps[2 * m] * e + lo_taps[2 * m + 1] * o)
        hi_terms.append(hi_taps[2 * m] * e + hi_taps[2 * m + 1] * o)
    # Balanced reduction tree (shorter dependency chain than a serial sum).
    lo_ref[...] = (lo_terms[0] + lo_terms[1]) + (lo_terms[2] + lo_terms[3])
    hi_ref[...] = (hi_terms[0] + hi_terms[1]) + (hi_terms[2] + hi_terms[3])


def _vmem_block_budget_bytes():
    """Conservative VMEM budget for the live blocks, derived from the actual chip."""
    cap = 64 * 1024 * 1024          # assume the smallest (v7x) if the query fails
    try:
        cap = int(pltpu.get_tpu_info().vmem_capacity_bytes)
    except Exception:
        pass
    # Stay well under the scoped-VMEM default on every generation (16 MiB on v5e).
    return min(12 * 1024 * 1024, cap // 8)


def _pick_row_tile(rows, in_w, out_w):
    """Row tile (multiple of 8): fits the VMEM budget, and leaves >=2 grid steps when
    the row count allows it (so a 'parallel' axis can feed both v7x TensorCores and the
    pipeline can double-buffer)."""
    bytes_per_row = (2 * in_w + 2 * out_w) * 4 * 2      # 2 in + 2 out blocks, x2 buffers
    tile = _vmem_block_budget_bytes() // max(bytes_per_row, 1)
    tile = int(max(8, min(1024, (tile // 8) * 8)))
    rows8 = max(8, -(-rows // 8) * 8)
    if rows8 >= 16:
        tile = min(tile, max(8, (rows8 // 2) // 8 * 8))  # at least 2 grid steps
    else:
        tile = min(tile, rows8)
    return tile


def dwt_1d_forward(x):
    """x: (B, C, T) float32, T even and >= 8.  Returns (low, high), each (B, C, T // 2)."""
    B, C, T = x.shape
    assert T % 2 == 0 and T >= 8, "T must be even and >= wavelet length (8 for db4)"
    t_out = T // 2
    rows = B * C

    # Lane-dense stores: compute a 128-multiple output width and slice afterwards.
    t_out_pad = ((t_out + 127) // 128) * 128
    in_w = t_out_pad + 3

    # ---- reflect pad + even/odd polyphase split -------------------------------------
    # These are plain pad / strided-slice producers; allow_input_fusion below lets XLA
    # fuse them into the Pallas input DMA instead of materialising them in HBM.
    # TODO(synk): only pad_type='reflect' (the module default) is implemented.
    xp = jnp.pad(x, ((0, 0), (0, 0), (3, 3)), mode="reflect").reshape(rows, T + 6)
    xe = xp[:, 0::2]                        # (rows, t_out + 3) == x_pad[2i]
    xo = xp[:, 1::2]                        # (rows, t_out + 3) == x_pad[2i + 1]
    if t_out_pad != t_out:
        lane_pad = ((0, 0), (0, t_out_pad - t_out))
        xe = jnp.pad(xe, lane_pad)
        xo = jnp.pad(xo, lane_pad)

    row_tile = _pick_row_tile(rows, in_w, t_out_pad)
    grid = (pl.cdiv(rows, row_tile),)       # ragged last block handled by Pallas masking

    kern = functools.partial(
        _dwt_polyphase_kernel,
        tuple(float(v) for v in DB4_REC_LO),
        tuple(float(v) for v in DB4_REC_HI),
    )
    in_spec = pl.BlockSpec((row_tile, in_w), lambda i: (i, 0))
    out_spec = pl.BlockSpec((row_tile, t_out_pad), lambda i: (i, 0))

    low, high = pl.pallas_call(
        kern,
        out_shape=(jax.ShapeDtypeStruct((rows, t_out_pad), jnp.float32),
                   jax.ShapeDtypeStruct((rows, t_out_pad), jnp.float32)),
        grid=grid,
        in_specs=[in_spec, in_spec],
        out_specs=(out_spec, out_spec),
        compiler_params=pltpu.CompilerParams(
            dimension_semantics=("parallel",),
            allow_input_fusion=[True, True],
        ),
    )(xe, xo)

    low = low[:, :t_out].reshape(B, C, t_out)
    high = high[:, :t_out].reshape(B, C, t_out)
    return low, high
    # TODO(synk): non-default out_channels / groups (i.e. non-depthwise grouped conv) and
    # trainable filters are not implemented; this covers the module's default config.


if __name__ == "__main__":
    # small shapes consistent with the module: batch=2, channels=8, sequence length 256
    # (T_out = 128 so the output lane dimension is fully dense, and B*C = 16 rows give
    # two 8-row grid steps on the parallel axis).
    B, C, T = 2, 8, 256
    key = jax.random.PRNGKey(0)
    x = jax.random.normal(key, (B, C, T), dtype=jnp.float32)

    fwd = jax.jit(dwt_1d_forward)
    low, high = fwd(x)
    jax.block_until_ready((low, high))

    assert low.shape == (B, C, T // 2)
    assert high.shape == (B, C, T // 2)

    # ---- numerical check against a direct strided cross-correlation reference ----
    t_out = T // 2
    x_np = np.asarray(x, dtype=np.float64)
    xp_np = np.pad(x_np, ((0, 0), (0, 0), (3, 3)), mode="reflect")
    ref_lo = np.zeros((B, C, t_out), dtype=np.float64)
    ref_hi = np.zeros((B, C, t_out), dtype=np.float64)
    for j in range(8):
        seg = xp_np[:, :, j:j + 2 * t_out:2]
        ref_lo += float(DB4_REC_LO[j]) * seg
        ref_hi += float(DB4_REC_HI[j]) * seg

    low_np = np.asarray(low)
    high_np = np.asarray(high)
    assert np.all(np.isfinite(low_np)) and np.all(np.isfinite(high_np))
    assert np.allclose(low_np, ref_lo, rtol=1e-4, atol=1e-4)
    assert np.allclose(high_np, ref_hi, rtol=1e-4, atol=1e-4)

    print("KERNEL_OK")
</pallas_src>

<mosaic_0001>
module attributes {stable_mosaic.version = 11 : i64} {
  func.func @_dwt_polyphase_kernel(%arg0: i32, %arg1: memref<8x131xf32, #tpu.memory_space<vmem>>, %arg2: memref<8x131xf32, #tpu.memory_space<vmem>>, %arg3: memref<8x128xf32, #tpu.memory_space<vmem>>, %arg4: memref<8x128xf32, #tpu.memory_space<vmem>>) attributes {dimension_semantics = [#tpu.dimension_semantics<parallel>], iteration_bounds = array<i64: 2>, scalar_prefetch = 0 : i64, scratch_operands = 0 : i64, tpu.core_type = #tpu.core_type<tc>, window_params = [{transform_indices = @transform_0, window_bounds = array<i64: 8, 131>}, {transform_indices = @transform_1, window_bounds = array<i64: 8, 131>}, {transform_indices = @transform_2, window_bounds = array<i64: 8, 128>}, {transform_indices = @transform_3, window_bounds = array<i64: 8, 128>}]} {
    %c0 = arith.constant 0 : index
    %c0_0 = arith.constant 0 : index
    %0 = vector.load %arg1[%c0, %c0_0] : memref<8x131xf32, #tpu.memory_space<vmem>>, vector<8x128xf32>
    %c0_1 = arith.constant 0 : index
    %c0_2 = arith.constant 0 : index
    %1 = vector.load %arg2[%c0_1, %c0_2] : memref<8x131xf32, #tpu.memory_space<vmem>>, vector<8x128xf32>
    %cst = arith.constant 0.230377808 : f32
    %2 = vector.broadcast %cst : f32 to vector<8x128xf32>
    %3 = arith.mulf %2, %0 : vector<8x128xf32>
    %cst_3 = arith.constant 0.714846551 : f32
    %4 = vector.broadcast %cst_3 : f32 to vector<8x128xf32>
    %5 = arith.mulf %4, %1 : vector<8x128xf32>
    %6 = arith.addf %3, %5 : vector<8x128xf32>
    %cst_4 = arith.constant -0.0105974022 : f32
    %7 = vector.broadcast %cst_4 : f32 to vector<8x128xf32>
    %8 = arith.mulf %7, %0 : vector<8x128xf32>
    %cst_5 = arith.constant -0.0328830108 : f32
    %9 = vector.broadcast %cst_5 : f32 to vector<8x128xf32>
    %10 = arith.mulf %9, %1 : vector<8x128xf32>
    %11 = arith.addf %8, %10 : vector<8x128xf32>
    %c0_6 = arith.constant 0 : index
    %c1 = arith.constant 1 : index
    %12 = vector.load %arg1[%c0_6, %c1] : memref<8x131xf32, #tpu.memory_space<vmem>>, vector<8x128xf32>
    %c0_7 = arith.constant 0 : index
    %c1_8 = arith.constant 1 : index
    %13 = vector.load %arg2[%c0_7, %c1_8] : memref<8x131xf32, #tpu.memory_space<vmem>>, vector<8x128xf32>
    %cst_9 = arith.constant 0.630880773 : f32
    %14 = vector.broadcast %cst_9 : f32 to vector<8x128xf32>
    %15 = arith.mulf %14, %12 : vector<8x128xf32>
    %cst_10 = arith.constant -0.0279837698 : f32
    %16 = vector.broadcast %cst_10 : f32 to vector<8x128xf32>
    %17 = arith.mulf %16, %13 : vector<8x128xf32>
    %18 = arith.addf %15, %17 : vector<8x128xf32>
    %cst_11 = arith.constant 0.0308413822 : f32
    %19 = vector.broadcast %cst_11 : f32 to vector<8x128xf32>
    %20 = arith.mulf %19, %12 : vector<8x128xf32>
    %cst_12 = arith.constant 0.187034816 : f32
    %21 = vector.broadcast %cst_12 : f32 to vector<8x128xf32>
    %22 = arith.mulf %21, %13 : vector<8x128xf32>
    %23 = arith.addf %20, %22 : vector<8x128xf32>
    %c0_13 = arith.constant 0 : index
    %c2 = arith.constant 2 : index
    %24 = vector.load %arg1[%c0_13, %c2] : memref<8x131xf32, #tpu.memory_space<vmem>>, vector<8x128xf32>
    %c0_14 = arith.constant 0 : index
    %c2_15 = arith.constant 2 : index
    %25 = vector.load %arg2[%c0_14, %c2_15] : memref<8x131xf32, #tpu.memory_space<vmem>>, vector<8x128xf32>
    %cst_16 = arith.constant -0.187034816 : f32
    %26 = vector.broadcast %cst_16 : f32 to vector<8x128xf32>
    %27 = arith.mulf %26, %24 : vector<8x128xf32>
    %cst_17 = arith.constant 0.0308413822 : f32
    %28 = vector.broadcast %cst_17 : f32 to vector<8x128xf32>
    %29 = arith.mulf %28, %25 : vector<8x128xf32>
    %30 = arith.addf %27, %29 : vector<8x128xf32>
    %cst_18 = arith.constant -0.0279837698 : f32
    %31 = vector.broadcast %cst_18 : f32 to vector<8x128xf32>
    %32 = arith.mulf %31, %24 : vector<8x128xf32>
    %cst_19 = arith.constant -0.630880773 : f32
    %33 = vector.broadcast %cst_19 : f32 to vector<8x128xf32>
    %34 = arith.mulf %33, %25 : vector<8x128xf32>
    %35 = arith.addf %32, %34 : vector<8x128xf32>
    %c0_20 = arith.constant 0 : index
    %c3 = arith.constant 3 : index
    %36 = vector.load %arg1[%c0_20, %c3] : memref<8x131xf32, #tpu.memory_space<vmem>>, vector<8x128xf32>
    %c0_21 = arith.constant 0 : index
    %c3_22 = arith.constant 3 : index
    %37 = vector.load %arg2[%c0_21, %c3_22] : memref<8x131xf32, #tpu.memory_space<vmem>>, vector<8x128xf32>
    %cst_23 = arith.constant 0.0328830108 : f32
    %38 = vector.broadcast %cst_23 : f32 to vector<8x128xf32>
    %39 = arith.mulf %38, %36 : vector<8x128xf32>
    %cst_24 = arith.constant -0.0105974022 : f32
    %40 = vector.broadcast %cst_24 : f32 to vector<8x128xf32>
    %41 = arith.mulf %40, %37 : vector<8x128xf32>
    %42 = arith.addf %39, %41 : vector<8x128xf32>
    %cst_25 = arith.constant 0.714846551 : f32
    %43 = vector.broadcast %cst_25 : f32 to vector<8x128xf32>
    %44 = arith.mulf %43, %36 : vector<8x128xf32>
    %cst_26 = arith.constant -0.230377808 : f32
    %45 = vector.broadcast %cst_26 : f32 to vector<8x128xf32>
    %46 = arith.mulf %45, %37 : vector<8x128xf32>
    %47 = arith.addf %44, %46 : vector<8x128xf32>
    %48 = arith.addf %6, %18 : vector<8x128xf32>
    %49 = arith.addf %30, %42 : vector<8x128xf32>
    %50 = arith.addf %48, %49 : vector<8x128xf32>
    %c0_27 = arith.constant 0 : index
    %c0_28 = arith.constant 0 : index
    %51 = vector.load %arg3[%c0_27, %c0_28] : memref<8x128xf32, #tpu.memory_space<vmem>>, vector<8x128xf32>
    tpu.vector_store %arg3[%c0_27, %c0_28], %50 {strides = array<i32>} : memref<8x128xf32, #tpu.memory_space<vmem>>, vector<8x128xf32>,
    %52 = arith.addf %11, %23 : vector<8x128xf32>
    %53 = arith.addf %35, %47 : vector<8x128xf32>
    %54 = arith.addf %52, %53 : vector<8x128xf32>
    %c0_29 = arith.constant 0 : index
    %c0_30 = arith.constant 0 : index
    %55 = vector.load %arg4[%c0_29, %c0_30] : memref<8x128xf32, #tpu.memory_space<vmem>>, vector<8x128xf32>
    tpu.vector_store %arg4[%c0_29, %c0_30], %54 {strides = array<i32>} : memref<8x128xf32, #tpu.memory_space<vmem>>, vector<8x128xf32>,
    return
  }
  func.func @transform_0(%arg0: i32) -> (i32, i32) {
    %c0_i32 = arith.constant 0 : i32
    %c0_i32_0 = arith.constant 0 : i32
    return %arg0, %c0_i32 : i32, i32
  }
  func.func @transform_1(%arg0: i32) -> (i32, i32) {
    %c0_i32 = arith.constant 0 : i32
    %c0_i32_0 = arith.constant 0 : i32
    return %arg0, %c0_i32 : i32, i32
  }
  func.func @transform_2(%arg0: i32) -> (i32, i32) {
    %c0_i32 = arith.constant 0 : i32
    %c0_i32_0 = arith.constant 0 : i32
    return %arg0, %c0_i32 : i32, i32
  }
  func.func @transform_3(%arg0: i32) -> (i32, i32) {
    %c0_i32 = arith.constant 0 : i32
    %c0_i32_0 = arith.constant 0 : i32
    return %arg0, %c0_i32 : i32, i32
  }
}

</mosaic_0001>

<bundles_post_ra>
// kernel: dwt_1d_forward.1
= control target key start
LH: loop header
LB: loop body
LE: loop exit
PB: predicated region body
PF: predicated region fallthrough
CT: control target
= control target key end

     0   :  { %9 = vsyncpa [#allocation3], 0  ;;  %s766_s0 = inlined_call_operand.vmem [shape: f32[16,131], index: 0, kind: input, shape index: {}]   ;;  %s767_s1 = inlined_call_operand.vmem [shape: f32[16,131], index: 1, kind: input, shape index: {}]   ;;  %s768_s2 = inlined_call_operand.hbm [shape: f32[16,128], index: 2, kind: output, shape index: {0}]   ;;  %s769_s3 = inlined_call_operand.hbm [shape: f32[16,128], index: 3, kind: output, shape index: {1}]  }
   0x1   :  { %11 = vsyncpa [#allocation3 + $0x1], 0 }
   0x2   :  { %12 = vsyncpa [#allocation5], 0 }
   0x3   :  { %14 = vsyncpa [#allocation5 + $0x1], 0  ;;  %s629_s12 = smov 0   ;;  %s631_s13 = smov 0  }
   0x4   :  { %s633_s14 = smov 0   ;;  %s635_s15 = smov 0  }
   0x5 LB: > { %s650_s16 = sadd.s32 4294967295, %s605_s15   ;;  %s447_s17 = sadd.s32 4294967294, %s605_s15   ;;  %s605_s15 = sphi %s635_s15, %s775_s15   ;;  %s601_s14 = sphi %s633_s14, %s774_s14   ;;  %s597_s13 = sphi %s631_s13, %s773_s13   ;;  %s593_s12 = sphi %s629_s12, %s772_s12  }
   0x6   : > { %s654_s18 = sadd.s32 1, %s605_s15   ;;  %s79_s19 = sadd.s32 1, %s601_s14 }
   0x7   : > { %s76_s20 = ssub.s32 %s605_s15, %s654_s18  ;;  %p89_p0 = scmp.ne.s32.totalorder %s601_s14, %s597_s13 }
   0x8   : > { %p77_p1 = scmp.eq.s32.totalorder %s76_s20, 0  ;;  %p90_p2 = scmp.eq.s32.totalorder %s650_s16, 1 }
   0x9   : > { %p95_p3 = scmp.ne.s32.totalorder %s597_s13, %s593_s12  ;;  %p96_p4 = scmp.eq.s32.totalorder %s447_s17, 1 }
   0xa   : > { %s665_s21 = scalar_select %p77_p1, %s601_s14, %s79_s19  }
   0xb   : > { %p667_p5 = por %p90_p2, %p89_p0  ;;  %p671_p6 = por %p96_p4, %p95_p3 }
   0xc   : > { %p450_p7 = scmp.ge.s32.totalorder %s605_s15, 1  ;;  %p156_p8 = scmp.lt.s32.totalorder %s605_s15, 3 }
   0xe   : > { %p157_p9 = pnand %p450_p7, %p156_p8 }
   0xf   : > { %p190_p10 = scmp.lt.s32.totalorder (!%p157_p9), %s650_s16, 1  ;;  %s607_s5 = smov (!%p157_p9), 127  }
  0x10   : > { %160 = sbr.rel (%p157_p9) target bundleno = 289 (0x121), region = 28  ;;  %s608_s6 = smov (!%p157_p9), 126  }
  0x11   : > { %s704_s7 = sand.u32 (!%p157_p9), 1, %s597_s13   ;;  %s459_s9 = sshll.u32 (!%p157_p9), %s650_s16, 3 }
  0x12   : > { %s451_s8 = sshll.u32 (!%p157_p9), %s704_s7, 3  ;;  %s324_s17 = scalar_lea.hbm (!%p157_p9), %s768_s2, %s459_s9 }
  0x13   : > { %s328_s27 = sshll.u32 (!%p157_p9), %s324_s17, 4  ;;  %s309_s30 = scalar_lea.sflag (!%p157_p9), [#allocation3], %s704_s7  ;;  %s329_s27 = int_to_ptr.hbm [resolvable:$true] %s328_s27 }
  0x15   : > { %s191_s24 = scalar_select %p190_p10, %s650_s16, 1  ;;  %vm252_vm0 = vcmask 1039360   ;;  %vm273_vm1 = vcmask 1031168  }
  0x16   : > { %s189_s16 = scalar_lea.vmem [#allocation4], %s451_s8 }
  0x17   : > { %s463_s25 = sshll.u32 %s191_s24, 4  ;;  %s338_s24 = scalar_lea.hbm %s769_s3, %s459_s9 }
  0x18   : > { %s194_s28 = scalar_lea.vmem %s766_s0, %s463_s25  ;;  %s199_s4 = scalar_lea.vmem %s767_s1, %s463_s25 }
  0x19   : > { %v685_v0 = vld [vmem:[%s194_s28] sm:$0xff]  ;;  %v208_v6 = vld [vmem:[%s194_s28 + $0x8] sm:$0xff]  ;;  %s182_s25 = scalar_lea.vmem [#allocation2], %s451_s8  ;;  %s340_s28 = sshll.u32 %s189_s16, 4  ;;  %s720_s28 = int_to_ptr.vmem [resolvable:$true] %s340_s28 }
  0x1a   : > { %v687_v1 = vld [vmem:[%s199_s4] sm:$0xff]  ;;  %v240_v2 = vmul.f32 0.71484655, %v685_v0  ;;  %v234_v4 = vmul.f32 0.03288301, %v685_v0  ;;  %v209_v7 = vld [vmem:[%s199_s4 + $0x8] sm:$0xff] }
  0x1b   : > { %v242_v3 = vmul.f32 -0.23037781, %v687_v1  ;;  %v236_v5 = vmul.f32 -0.010597402, %v687_v1  ;;  %v210_v10 = vmul.f32 0.6308808, %v685_v0 }
  0x1c   : > { %v212_v11 = vmul.f32 -0.02798377, %v687_v1  ;;  %v241_v12 = vmul.f32 0.71484655, %v208_v6  ;;  %v243_v13 = vmul.f32 -0.23037781, %v209_v7 }
  0x1d   : > { %v244_v8 = vadd.f32 %v242_v3, %v240_v2  ;;  %v238_v9 = vadd.f32 %v236_v5, %v234_v4  ;;  %v235_v14 = vmul.f32 0.03288301, %v208_v6  ;;  %v237_v15 = vmul.f32 -0.010597402, %v209_v7  ;;  %s326_s26 = sshll.u32 %s182_s25, 4  ;;  %s342_s29 = sshll.u32 %s338_s24, 4  ;;  %s327_s26 = int_to_ptr.vmem [resolvable:$true] %s326_s26  ;;  %s722_s29 = int_to_ptr.hbm [resolvable:$true] %s342_s29 }
  0x1e   : > { %v214_v16 = vadd.f32 %v212_v11, %v210_v10  ;;  %v245_v17 = vadd.f32 %v243_v13, %v241_v12  ;;  %v216_v19 = vmul.f32 0.030841382, %v685_v0  ;;  %v218_v20 = vmul.f32 0.18703482, %v687_v1  ;;  %s525_s4 = sshra.s32 %s329_s27, 4  ;;  %s531_s9 = scalar_lea.hbm %s768_s2, 16  ;;  %s526_s4 = int_to_ptr.hbm [resolvable:$true] %s525_s4 }
  0x1f   : > { %289 = vrot.lane.b32.xlu1 %v244_v8, %s607_s5  ;;  %258 = vrot.lane.b32.xlu0 %v238_v9, %s607_s5  ;;  %v239_v18 = vadd.f32 %v237_v15, %v235_v14  ;;  %v217_v21 = vmul.f32 0.030841382, %v208_v6  ;;  %v219_v22 = vmul.f32 0.18703482, %v209_v7  ;;  %v211_v23 = vmul.f32 0.6308808, %v208_v6  ;;  %p532_p0 = scmp.lt.s32.totalorder %s526_s4, %s768_s2 }
  0x20   : > { %248 = vrot.lane.b32.xlu2 %v214_v16, %s607_s5  ;;  %v220_v24 = vadd.f32 %v218_v20, %v216_v19  ;;  %v213_v25 = vmul.f32 -0.02798377, %v209_v7  ;;  %v230_v30 = vmul.f32 -0.6308808, %v687_v1  ;;  %v228_v31 = vmul.f32 -0.02798377, %v685_v0 }
  0x21   : > { %v221_v26 = vadd.f32 %v219_v22, %v217_v21  ;;  %v223_v32 = vmul.f32 -0.18703482, %v208_v6  ;;  %v225_v33 = vmul.f32 0.030841382, %v209_v7  ;;  %v224_v34 = vmul.f32 0.030841382, %v687_v1 }
  0x22   : > { %v215_v27 = vadd.f32 %v213_v25, %v211_v23  ;;  %v222_v35 = vmul.f32 -0.18703482, %v685_v0  ;;  %v232_v36 = vadd.f32 %v230_v30, %v228_v31  ;;  %v229_v45 = vmul.f32 -0.02798377, %v208_v6 }
  0x23   : > { %v227_v37 = vadd.f32 %v225_v33, %v223_v32  ;;  %v231_v46 = vmul.f32 -0.6308808, %v209_v7  ;;  %v203_v55 = vmul.f32 0.71484655, %v687_v1  ;;  %v202_v56 = vmul.f32 0.23037781, %v685_v0 }
  0x24   : > { %v226_v38 = vadd.f32 %v224_v34, %v222_v35  ;;  %v206_v57 = vmul.f32 -0.03288301, %v687_v1  ;;  %v205_v58 = vmul.f32 -0.010597402, %v685_v0 }
  0x25   : > { %v233_v48 = vadd.f32 %v231_v46, %v229_v45  ;;  %v204_v59 = vadd.f32 %v203_v55, %v202_v56 }
  0x26   : > { %v207_v60 = vadd.f32 %v206_v57, %v205_v58 }
  0x27   : > { %291 = vrot.lane.b32.xlu1 %v245_v17, %s607_s5  ;;  %260 = vrot.lane.b32.xlu0 %v239_v18, %s607_s5 }
  0x28   : > { %250 = vrot.lane.b32.xlu2 %v215_v27, %s607_s5 }
  0x2f   : > { %280 = vrot.lane.b32.xlu0 %v220_v24, %s607_s5  ;;  %282 = vrot.lane.b32.xlu1 %v221_v26, %s607_s5  ;;  %s527_s5 = scalar_lea.hbm %s526_s4, 8 }
  0x30   : > { %p528_p11 = scmp.ne.s32.totalorder %s526_s4, %s527_s5  ;;  %p533_p1 = scmp.lt.s32.totalorder %s531_s9, %s527_s5 }
  0x32   : > { %p529_p12 = pnand %p528_p11, %p667_p5  ;;  %p534_p2 = por %p533_p1, %p532_p0 }
  0x34   : > { %p530_p13 = pneg %p529_p12 }
  0x36   : > { %p535_p3 = pnand %p534_p2, %p530_p13 }
  0x7a   : > { %v249_v50 = vpop.permute.xlu2 %248 }
  0x82   : > { %v251_v51 = vpop.permute.xlu2 %250 }
  0x83   : > { %v253_v61 = vsel %vm252_vm0, %v249_v50, %v251_v51 }
  0x84   : > { %v255_v0 = vadd.f32 %v253_v61, %v204_v59 }
  0x91   : > { %v290_v28 = vpop.permute.xlu1 %289  ;;  %v259_v29 = vpop.permute.xlu0 %258 }
  0x99   : > { %v292_v39 = vpop.permute.xlu1 %291  ;;  %v261_v41 = vpop.permute.xlu0 %260 }
  0x9a   : > { %v293_v40 = vsel %vm252_vm0, %v290_v28, %v292_v39  ;;  %v262_v43 = vsel %vm252_vm0, %v259_v29, %v261_v41  ;;  %v266_v44 = vadd.f32 %v261_v41, %v227_v37  ;;  %v297_v49 = vadd.f32 %v292_v39, %v233_v48 }
  0x9b   : > { %v296_v42 = vadd.f32 %v293_v40, %v232_v36  ;;  %v265_v47 = vadd.f32 %v262_v43, %v226_v38 }
  0x9c   : > { %271 = vrot.lane.b32.xlu0 %v266_v44, %s608_s6 }
  0x9d   : > { %300 = vrot.lane.b32.xlu1 %v296_v42, %s608_s6  ;;  %269 = vrot.lane.b32.xlu2 %v265_v47, %s608_s6 }
  0xa1   : > { %v281_v53 = vpop.permute.xlu0 %280  ;;  %v283_v54 = vpop.permute.xlu1 %282 }
  0xa2   : > { %v284_v62 = vsel %vm252_vm0, %v281_v53, %v283_v54 }
  0xa3   : > { %v286_v1 = vadd.f32 %v284_v62, %v207_v60 }
  0xa5   : > { %302 = vrot.lane.b32.xlu2 %v297_v49, %s608_s6 }
  0xf7   : > { %v270_v52 = vpop.permute.xlu2 %269 }
  0xff   : > { %v303_v63 = vpop.permute.xlu2 %302 }
 0x10e   : > { %v272_v2 = vpop.permute.xlu0 %271 }
 0x10f   : > { %v301_v3 = vpop.permute.xlu1 %300  ;;  %v274_v4 = vsel %vm273_vm1, %v270_v52, %v272_v2 }
 0x110   : > { %v304_v5 = vsel %vm273_vm1, %v301_v3, %v303_v63  ;;  %v276_v6 = vadd.f32 %v274_v4, %v255_v0 }
 0x111   : > { %v306_v7 = vadd.f32 %v304_v5, %v286_v1 }
 0x112   : > { %277 = vst [vmem:[%s182_s25] sm:$0xff] %v276_v6 }
 0x113   : > { %538 = shalt.err (!%p535_p3)
}
 0x114   : > { %465 = dma.vmem_to_hbm [thread:$0]  (%p667_p5), %s327_s26, 128, %s329_s27, %s309_s30   ;;  %307 = vst [vmem:[%s189_s16] sm:$0xff] %v306_v7 }
 0x115   : > { %s314_s17 = scalar_lea.sflag [#allocation5], %s704_s7  ;;  %s553_s19 = sshra.s32 %s722_s29, 4  ;;  %s554_s19 = int_to_ptr.hbm [resolvable:$true] %s553_s19 }
 0x116   : > { %s555_s20 = scalar_lea.hbm %s554_s19, 8  ;;  %s559_s4 = scalar_lea.hbm %s769_s3, 16 }
 0x117   : > { %p556_p4 = scmp.ne.s32.totalorder %s554_s19, %s555_s20  ;;  %p560_p9 = scmp.lt.s32.totalorder %s554_s19, %s769_s3 }
 0x118   : > { %p561_p10 = scmp.lt.s32.totalorder %s559_s4, %s555_s20 }
 0x119   : > { %p557_p7 = pnand %p556_p4, %p667_p5 }
 0x11a   : > { %p562_p11 = por %p561_p10, %p560_p9 }
 0x11b   : > { %p558_p8 = pneg %p557_p7 }
 0x11d   : > { %p563_p12 = pnand %p562_p11, %p558_p8 }
 0x11f   : > { %566 = shalt.err (!%p563_p12)
}
 0x120   : > { %466 = dma.vmem_to_hbm [thread:$0]  (%p667_p5), %s720_s28, 128, %s722_s29, %s314_s17  }
 0x121 PF: > { %p476_p13 = scmp.ge.s32.totalorder %s605_s15, 2  ;;  %s354_s7 = sand.u32 1, %s593_s12  }
 0x122   : > { %s355_s26 = scalar_lea.sflag [#allocation3], %s354_s7 }
 0x123   : > { %p470_p0 = pnand %p476_p13, %p671_p6 }
 0x125   : > { %p471_p1 = pneg %p470_p0 }
 0x127   : > { %584 = dma.done.wait (%p471_p1), %s355_s26, 128  }
 0x128   : > { %586 = vsyncadd (%p471_p1), %s355_s26, 4294967168  ;;  %s365_s27 = scalar_lea.sflag [#allocation5], %s354_s7 }
 0x129   : > { %588 = dma.done.wait (%p471_p1), %s365_s27, 128  }
 0x12a   : > { %590 = vsyncadd (%p471_p1), %s365_s27, 4294967168  ;;  %p17_p5 = scmp.ge.s32.totalorder %s654_s18, 4   ;;  %s772_s12 = smov %s597_s13 }
 0x12b   : > { %s773_s13 = smov %s601_s14  ;;  %s774_s14 = smov %s665_s21 }
 0x12c   : > { %s775_s15 = smov %s654_s18  ;;  %19 = sbr.rel (!%p17_p5) target bundleno = 5 (0x5), region = 83 }
 0x131   :  { %371 = vsyncpa [#allocation3], 1 }
 0x132   :  { %373 = vsyncpa [#allocation3 + $0x1], 1 }
 0x133   :  { %374 = vsyncpa [#allocation5], 1 }
 0x134   :  { %376 = vsyncpa [#allocation5 + $0x1], 1 }

</bundles_post_ra>
